<compile_context>
chip_gen: v7x
topology: tpu7x:2x2x1
jax: 0.10.0
libtpu: 0.0.40
codegen_flags: <defaults>
</compile_context>

<pallas_src>
import functools
import math

import jax
import jax.numpy as jnp
from jax.experimental import pallas as pl
from jax.experimental.pallas import tpu as pltpu

_TARGET_BLOCK_BYTES = 8 * 1024 * 1024   # per-input, per-buffer VMEM block target
_VMEM_LIMIT_BYTES = 48 * 1024 * 1024    # 2 inputs x 2 buffers x 8 MiB + margin


def _weighted_l1_kernel(inp_ref, outp_ref, w_ref, out_ref, acc_ref, *,
                        n_valid_rows, inv_n, needs_mask):
    pid = pl.program_id(0)
    last = pl.num_programs(0) - 1

    @pl.when(pid == 0)
    def _init():
        acc_ref[...] = jnp.zeros_like(acc_ref)

    # abs-diff in f32 (cast after load: correct for f32/bf16 on all generations).
    d = jnp.abs(inp_ref[...].astype(jnp.float32) - outp_ref[...].astype(jnp.float32))

    if needs_mask:
        # Only the final tile can read past the (n_rows, W) array; every other
        # tile skips the iota/compare/select entirely.
        @pl.when(pid != last)
        def _full_tile():
            acc_ref[...] += jnp.sum(d, axis=0, keepdims=True)

        @pl.when(pid == last)
        def _ragged_tile():
            tm = d.shape[0]
            row = jax.lax.broadcasted_iota(jnp.int32, d.shape, 0) + pid * tm
            dm = jnp.where(row < n_valid_rows, d, 0.0)
            acc_ref[...] += jnp.sum(dm, axis=0, keepdims=True)
    else:
        acc_ref[...] += jnp.sum(d, axis=0, keepdims=True)

    # Finalize once: per-channel weighting + single cross-lane reduce + mean.
    @pl.when(pid == last)
    def _fin():
        out_ref[0, 0] = jnp.sum(acc_ref[...] * w_ref[...]) * inv_n


def custom_weighted_loss(inp, outp, *, tile_rows=None):
    """Pallas implementation of CustomWeightedLoss.forward.

    inp, outp: arrays of shape (..., C) with C >= 3 (polarizations last).
    bf16 inputs are accepted directly (halving HBM traffic); do not pre-cast.
    Returns a scalar float32 loss.
    """
    assert inp.shape == outp.shape
    channels = inp.shape[-1]
    assert channels >= 3
    total = math.prod(inp.shape)
    n_per_channel = total // channels

    # Lane-dense row width: smallest multiple of C that is also a multiple of
    # 128, so every row holds whole channel groups and the weights are per-lane.
    row_width = (channels * 128) // math.gcd(channels, 128)

    # Flatten in native row-major order (free); pad to a multiple of row_width
    # only when required (padded zeros contribute |0-0| * w = 0).
    flat_in = inp.reshape(-1)
    flat_out = outp.reshape(-1)
    rem = total % row_width
    if rem:
        # TODO(synk): for very large ragged inputs a tiny tail epilogue would
        # avoid this pad copy; it only triggers when the flattened size is not
        # already a multiple of lcm(C, 128).
        pad = row_width - rem
        flat_in = jnp.pad(flat_in, (0, pad))
        flat_out = jnp.pad(flat_out, (0, pad))
    n_rows = (total + (row_width - rem) % row_width) // row_width
    inp2d = flat_in.reshape(n_rows, row_width)
    outp2d = flat_out.reshape(n_rows, row_width)

    # Tile rows: target ~8 MiB per input block (amortizes the ~0.35 us/step
    # pipeline overhead to a few % of the HBM time), multiple of 8, <= n_rows.
    itemsize = jnp.dtype(inp.dtype).itemsize
    if tile_rows is None:
        tile_rows = _TARGET_BLOCK_BYTES // (row_width * itemsize)
    tm_cap = max(8, (int(tile_rows) // 8) * 8)
    tm = min(tm_cap, (n_rows // 8) * 8) if n_rows >= 8 else n_rows
    grid = (pl.cdiv(n_rows, tm),)
    needs_mask = (n_rows % tm) != 0

    # Per-lane weight row: channels 0/1/2 -> 1/10/100, extra channels -> 0.
    base = [0.0] * channels
    base[0], base[1], base[2] = 1.0, 10.0, 100.0
    w_row = jnp.asarray(base * (row_width // channels), dtype=jnp.float32)
    w_row = w_row.reshape(1, row_width)

    kernel = functools.partial(
        _weighted_l1_kernel,
        n_valid_rows=n_rows,
        inv_n=1.0 / n_per_channel,
        needs_mask=needs_mask,
    )

    out = pl.pallas_call(
        kernel,
        out_shape=jax.ShapeDtypeStruct((1, 1), jnp.float32),
        grid=grid,
        in_specs=[
            pl.BlockSpec((tm, row_width), lambda i: (i, 0)),
            pl.BlockSpec((tm, row_width), lambda i: (i, 0)),
            pl.BlockSpec((1, row_width), lambda i: (0, 0)),   # resident weights
        ],
        out_specs=pl.BlockSpec(memory_space=pltpu.SMEM),
        scratch_shapes=[pltpu.VMEM((1, row_width), jnp.float32)],
        compiler_params=pltpu.CompilerParams(
            dimension_semantics=("arbitrary",),
            vmem_limit_bytes=_VMEM_LIMIT_BYTES,
        ),
        cost_estimate=pl.CostEstimate(
            flops=3 * total,
            transcendentals=0,
            bytes_accessed=2 * n_rows * row_width * itemsize + 4,
        ),
    )(inp2d, outp2d, w_row)
    return out[0, 0]


def _reference_loss(inp, outp):
    # Pure-JAX reference mirroring the torch code exactly.
    def l1(a, b):
        return jnp.mean(jnp.abs(a - b))

    return (
        l1(inp[..., 0], outp[..., 0])
        + l1(10.0 * inp[..., 1], 10.0 * outp[..., 1])
        + l1(100.0 * inp[..., 2], 100.0 * outp[..., 2])
    )


if __name__ == "__main__":
    key = jax.random.PRNGKey(0)
    k1, k2, k3, k4, k5, k6 = jax.random.split(key, 6)

    # (batch, seq, 3 polarizations) — module's natural shape; single-tile path.
    inp = jax.random.normal(k1, (2, 16, 3), dtype=jnp.float32)
    outp = jax.random.normal(k2, (2, 16, 3), dtype=jnp.float32)
    loss = jax.block_until_ready(custom_weighted_loss(inp, outp))
    ref = _reference_loss(inp, outp)
    assert jnp.allclose(loss, ref, rtol=1e-5, atol=1e-5), (loss, ref)

    # C > 3 (extra channels ignored), multi-step grid, ragged last tile (mask).
    inp2 = jax.random.normal(k3, (3, 300, 4), dtype=jnp.float32)
    outp2 = jax.random.normal(k4, (3, 300, 4), dtype=jnp.float32)
    loss2 = jax.block_until_ready(custom_weighted_loss(inp2, outp2, tile_rows=8))
    ref2 = _reference_loss(inp2, outp2)
    assert jnp.allclose(loss2, ref2, rtol=1e-5, atol=1e-5), (loss2, ref2)

    # No-pad fast path, multi-step accumulation, no mask needed.
    inp3 = jax.random.normal(k5, (4, 512, 3), dtype=jnp.float32)
    outp3 = jax.random.normal(k6, (4, 512, 3), dtype=jnp.float32)
    loss3 = jax.block_until_ready(custom_weighted_loss(inp3, outp3, tile_rows=8))
    ref3 = _reference_loss(inp3, outp3)
    assert jnp.allclose(loss3, ref3, rtol=1e-5, atol=1e-5), (loss3, ref3)

    print("KERNEL_OK")
</pallas_src>

<mosaic_0001>
module attributes {stable_mosaic.version = 11 : i64} {
  func.func @_weighted_l1_kernel(%arg0: i32, %arg1: memref<1x384xf32, #tpu.memory_space<vmem>>, %arg2: memref<1x384xf32, #tpu.memory_space<vmem>>, %arg3: memref<1x384xf32, #tpu.memory_space<vmem>>, %arg4: memref<1x1xf32, #tpu.memory_space<smem>>, %arg5: memref<1x384xf32, #tpu.memory_space<vmem>>) attributes {dimension_semantics = [#tpu.dimension_semantics<arbitrary>], iteration_bounds = array<i64: 1>, scalar_prefetch = 0 : i64, scratch_operands = 1 : i64, tpu.core_type = #tpu.core_type<tc>, window_params = [{transform_indices = @transform_0, window_bounds = array<i64: 1, 384>}, {transform_indices = @transform_1, window_bounds = array<i64: 1, 384>}, {pipeline_mode = #tpu.pipeline_mode<synchronous>, transform_indices = @transform_2, window_bounds = array<i64: 1, 384>}, {transform_indices = @transform_3, window_bounds = array<i64: 1, 1>}]} {
    %c0_i32 = arith.constant 0 : i32
    %0 = arith.cmpi eq, %arg0, %c0_i32 : i32
    %1 = arith.extui %0 : i1 to i32
    %c0_i32_0 = arith.constant 0 : i32
    %2 = arith.cmpi ne, %1, %c0_i32_0 : i32
    scf.if %2 {
      %cst_10 = arith.constant 0.000000e+00 : f32
      %15 = vector.broadcast %cst_10 : f32 to vector<1x384xf32>
      %c0_11 = arith.constant 0 : index
      %c0_12 = arith.constant 0 : index
      %16 = vector.load %arg5[%c0_11, %c0_12] : memref<1x384xf32, #tpu.memory_space<vmem>>, vector<1x384xf32>
      tpu.vector_store %arg5[%c0_11, %c0_12], %15 {strides = array<i32>} : memref<1x384xf32, #tpu.memory_space<vmem>>, vector<1x384xf32>,
    } else {
    }
    %c0 = arith.constant 0 : index
    %c0_1 = arith.constant 0 : index
    %3 = vector.load %arg1[%c0, %c0_1] : memref<1x384xf32, #tpu.memory_space<vmem>>, vector<1x384xf32>
    %c0_2 = arith.constant 0 : index
    %c0_3 = arith.constant 0 : index
    %4 = vector.load %arg2[%c0_2, %c0_3] : memref<1x384xf32, #tpu.memory_space<vmem>>, vector<1x384xf32>
    %5 = arith.subf %3, %4 : vector<1x384xf32>
    %6 = math.absf %5 : vector<1x384xf32>
    %c0_4 = arith.constant 0 : index
    %c0_5 = arith.constant 0 : index
    %7 = vector.load %arg5[%c0_4, %c0_5] : memref<1x384xf32, #tpu.memory_space<vmem>>, vector<1x384xf32>
    %cst = arith.constant dense<0.000000e+00> : vector<384xf32>
    %8 = vector.multi_reduction <add>, %6, %cst [0] : vector<1x384xf32> to vector<384xf32>
    %9 = vector.shape_cast %8 : vector<384xf32> to vector<1x384xf32>
    %10 = arith.addf %7, %9 : vector<1x384xf32>
    %c0_6 = arith.constant 0 : index
    %c0_7 = arith.constant 0 : index
    %11 = vector.load %arg5[%c0_6, %c0_7] : memref<1x384xf32, #tpu.memory_space<vmem>>, vector<1x384xf32>
    tpu.vector_store %arg5[%c0_6, %c0_7], %10 {strides = array<i32>} : memref<1x384xf32, #tpu.memory_space<vmem>>, vector<1x384xf32>,
    %c0_i32_8 = arith.constant 0 : i32
    %12 = arith.cmpi eq, %arg0, %c0_i32_8 : i32
    %13 = arith.extui %12 : i1 to i32
    %c0_i32_9 = arith.constant 0 : i32
    %14 = arith.cmpi ne, %13, %c0_i32_9 : i32
    scf.if %14 {
      %c0_10 = arith.constant 0 : index
      %c0_11 = arith.constant 0 : index
      %15 = vector.load %arg5[%c0_10, %c0_11] : memref<1x384xf32, #tpu.memory_space<vmem>>, vector<1x384xf32>
      %c0_12 = arith.constant 0 : index
      %c0_13 = arith.constant 0 : index
      %16 = vector.load %arg3[%c0_12, %c0_13] : memref<1x384xf32, #tpu.memory_space<vmem>>, vector<1x384xf32>
      %17 = arith.mulf %15, %16 : vector<1x384xf32>
      %18 = vector.shape_cast %17 : vector<1x384xf32> to vector<1x1x384xf32>
      %cst_14 = arith.constant dense<0.000000e+00> : vector<1xf32>
      %19 = vector.multi_reduction <add>, %18, %cst_14 [1, 2] : vector<1x1x384xf32> to vector<1xf32>
      %20 = vector.shape_cast %19 : vector<1xf32> to vector<1x1x1xf32>
      %21 = vector.extract %20[0, 0, 0] : f32 from vector<1x1x1xf32>
      %cst_15 = arith.constant 3.125000e-02 : f32
      %22 = arith.mulf %21, %cst_15 : f32
      %c0_16 = arith.constant 0 : index
      %c0_17 = arith.constant 0 : index
      %23 = memref.load %arg4[%c0_16, %c0_17] : memref<1x1xf32, #tpu.memory_space<smem>>
      memref.store %22, %arg4[%c0_16, %c0_17] : memref<1x1xf32, #tpu.memory_space<smem>>
    } else {
    }
    return
  }
  func.func @transform_0(%arg0: i32) -> (i32, i32) {
    %c0_i32 = arith.constant 0 : i32
    %c0_i32_0 = arith.constant 0 : i32
    return %arg0, %c0_i32 : i32, i32
  }
  func.func @transform_1(%arg0: i32) -> (i32, i32) {
    %c0_i32 = arith.constant 0 : i32
    %c0_i32_0 = arith.constant 0 : i32
    return %arg0, %c0_i32 : i32, i32
  }
  func.func @transform_2(%arg0: i32) -> (i32, i32) {
    %c0_i32 = arith.constant 0 : i32
    %c0_i32_0 = arith.constant 0 : i32
    %c0_i32_1 = arith.constant 0 : i32
    return %c0_i32, %c0_i32_0 : i32, i32
  }
  func.func @transform_3(%arg0: i32) -> (i32, i32) {
    %c0_i32 = arith.constant 0 : i32
    %c0_i32_0 = arith.constant 0 : i32
    %c0_i32_1 = arith.constant 0 : i32
    return %c0_i32, %c0_i32_0 : i32, i32
  }
}

</mosaic_0001>

<bundles_post_ra>
// kernel: tpu_custom_call.1
= control target key start
LH: loop header
LB: loop body
LE: loop exit
PB: predicated region body
PF: predicated region fallthrough
CT: control target
= control target key end

     0   :  { %8 = vsyncpa [#allocation4], 0  ;;  %s196_s0 = inlined_call_operand.hbm [shape: f32[1,384], index: 0, kind: input, shape index: {}]   ;;  %s197_s1 = inlined_call_operand.vmem [shape: f32[1,384], index: 1, kind: input, shape index: {}]   ;;  %s198_s2 = inlined_call_operand.vmem [shape: f32[1,384], index: 2, kind: input, shape index: {}]   ;;  %s199_s3 = inlined_call_operand.hbm [shape: f32[1,1], index: 3, kind: output, shape index: {}]  }
   0x1   :  { %9 = vsyncpa [#allocation5], 0  ;;  %s143_s12 = smov [#allocation3]   ;;  %s107_s16 = scalar_lea.hbm %s196_s0, 48 }
   0x2   :  { %s16_s13 = sshll.u32 %s143_s12, 4  ;;  %p108_p0 = scmp.ne.s32.totalorder %s196_s0, %s107_s16  ;;  %s17_s13 = int_to_ptr.vmem [resolvable:$true] %s16_s13 }
   0x3   :  { %p111_p1 = scmp.lt.u32.totalorder %s107_s16, %s196_s0 }
   0x5   :  { %p113_p2 = pnand %p111_p1, %p108_p0 }
   0x7   :  { %116 = shalt.err (!%p113_p2)
}
   0x8   :  { %s117_s21 = scalar_lea.vmem %s17_s13, 48  ;;  %s121_s22 = scalar_lea.vmem %s17_s13, 64 }
   0x9   :  { %p118_p3 = scmp.ne.s32.totalorder %s17_s13, %s117_s21  ;;  %p122_p4 = scmp.lt.s32.totalorder %s17_s13, %s17_s13 }
   0xa   :  { %p123_p5 = scmp.lt.s32.totalorder %s121_s22, %s117_s21 }
   0xc   :  { %p124_p6 = por %p123_p5, %p122_p4 }
   0xe   :  { %p125_p7 = pnand %p124_p6, %p118_p3 }
  0x10   :  { %128 = shalt.err (!%p125_p7)
}
  0x11   :  { %19 = dma.hbm_to_vmem [thread:$0]  %s196_s0, 48, %s17_s13, [#allocation4]  }
  0x12   :  { %139 = dma.done.wait [#allocation4], 48  }
  0x13   :  { %140 = vsyncadd [#allocation4], 4294967248  ;;  %v31_v0 = vlaneseq  ;;  %v144_v1 = vmov 0.0   ;;  %v36_v2 = vld [vmem:[#allocation3] sm:$0x7]  ;;  %vm70_vm1 = vcmask 1040384  }
  0x14   :  { %v37_v3 = vld [vmem:[%s197_s1] sm:$0x7]  ;;  %s129_s30 = scalar_lea.hbm %s199_s3, 16 }
  0x15   :  { %vm33_vm0 = vcmp.lt.s32.totalorder %v31_v0, 384  ;;  %v38_v4 = vsub.f32 %v36_v2, %v37_v3  ;;  %v56_v8 = vshrl.u32 %v31_v0, 7  ;;  %v52_v9 = vld [vmem:[%s198_s2] sm:$0x7]  ;;  %p130_p8 = scmp.ne.s32.totalorder %s199_s3, %s129_s30  ;;  %p133_p9 = scmp.lt.u32.totalorder %s129_s30, %s199_s3 }
  0x16   :  { %35 = vst.msk [vmem:[#allocation2] sm:$0x7] %vm33_vm0, %v144_v1 }
  0x17   :  { %v39_v5 = vand.u32 2147483647, %v38_v4  ;;  %v57_v10 = vsub.s32 0, %v56_v8  ;;  %v61_v11 = vsub.s32 1, %v56_v8  ;;  %v65_v12 = vsub.s32 2, %v56_v8  ;;  %p135_p10 = pnand %p133_p9, %p130_p8 }
  0x1d   :  { %v40_v6 = vld [vmem:[#allocation2] sm:$0x7] }
  0x1e   :  { %v42_v7 = vadd.f32 %v40_v6, %v39_v5 }
  0x20   :  { %47 = vst.msk [vmem:[#allocation2] sm:$0x7] %vm33_vm0, %v42_v7 }
  0x27   :  { %v51_v13 = vld [vmem:[#allocation2] sm:$0x7] }
  0x28   :  { %v53_v14 = vmul.f32 %v52_v9, %v51_v13 }
  0x2a   :  { %v58_v15 = vrot.slane %v53_v14, %v57_v10  ;;  %v62_v16 = vrot.slane %v53_v14, %v61_v11  ;;  %v66_v17 = vrot.slane %v53_v14, %v65_v12 }
  0x2c   :  { %v71_v18 = vsel %vm70_vm1, %v58_v15, 0.0  ;;  %v72_v19 = vsel %vm70_vm1, %v62_v16, 0.0  ;;  %v74_v20 = vsel %vm70_vm1, %v66_v17, 0.0 }
  0x2d   :  { %v73_v21 = vadd.f32 %v72_v19, %v71_v18 }
  0x2f   :  { %v75_v22 = vadd.f32 %v74_v20, %v73_v21 }
  0x31   :  { %76 = vadd.xlane.f32.xlu0 %v75_v22 }
  0xbe   :  { %v77_v23 = vpop.xlane.xlu0 %76 }
  0xbf   :  { %v78_v24 = vrot.slane %v77_v23, 4 }
  0xc1   :  { %v79_v25 = vadd.f32 %v78_v24, %v77_v23 }
  0xc3   :  { %v80_v26 = vrot.slane %v79_v25, 2 }
  0xc5   :  { %v81_v27 = vadd.f32 %v80_v26, %v79_v25 }
  0xc7   :  { %v82_v28 = vrot.slane %v81_v27, 1 }
  0xc9   :  { %v83_v29 = vadd.f32 %v82_v28, %v81_v27 }
  0xcb   :  { %102 = vpush %v83_v29 }
  0xfc   :  { %s103_s0 = spop %102 }
  0xfd   :  { %s85_s1 = smul.f32 0.03125, %s103_s0 }
  0xff   :  { %87 = sst [smem:[#allocation6]] %s85_s1 }
 0x100   :  { %138 = shalt.err (!%p135_p10)
}
 0x101   :  { %s145_s8 = smov [#allocation6]  }
 0x102   :  { %95 = dma.smem_to_hbm %s145_s8, 16, %s199_s3, [#allocation5]  }
 0x103   :  { %141 = dma.done.wait [#allocation5], 16  }
 0x104   :  { %142 = vsyncadd [#allocation5], 4294967280 }
 0x105   :  { %99 = sfence }
 0x106   :  { %100 = vsyncpa [#allocation4], 1 }
 0x107   :  { %101 = vsyncpa [#allocation5], 1 }

</bundles_post_ra>
